<compile_context>
chip_gen: v5e
topology: v5e:2x2
jax: 0.10.0
libtpu: 0.0.40
codegen_flags: <defaults>
</compile_context>

<pallas_src>
import math
import numpy as np

import jax
import jax.numpy as jnp
from jax import lax
from jax.experimental import pallas as pl
from jax.experimental.pallas import tpu as pltpu

NEG_SLOPE = 0.2
K = 3  # 3x3 convolutions


def _leaky_relu(v):
    # max(v, 0.2*v) == LeakyReLU(0.2) for all v (one vmul + vmax on the VPU).
    return jnp.maximum(v, NEG_SLOPE * v)


def resblockup_kernel(x_ref, w1p_ref, b1p_ref, w2p_ref, b2_ref, o_ref,
                      xr_ref, h1r_ref):
    # x_ref   : (B_blk, H, W*Cin)        f32 batch-block of row-major images
    # w1p_ref : (3*W*Cin, 2*W*Cout)      bf16 [conv1 K-fused bands | 1x1 shortcut]
    # b1p_ref : (1, 2*W*Cout)            f32  [conv1 bias | shortcut bias] (tiled)
    # w2p_ref : (3*W*Cout, W*Cout)       bf16 conv2 K-fused banded weights
    # b2_ref  : (1, W*Cout)              f32  conv2 bias (tiled)
    # o_ref   : (B_blk, H, W*Cout)       f32 lane-dense output block
    # xr_ref  : (B_blk, H+2, W*Cin)      f32 VMEM scratch (per-image vertical halo)
    # h1r_ref : (B_blk, H+2, W*Cout)     f32 VMEM scratch (per-image vertical halo)
    Bb, H, WCi = x_ref.shape
    WCo = o_ref.shape[2]

    # Vertical halo: zero only the per-image border rows; interior rows are fully
    # overwritten every grid step (no full-scratch memset, no program_id gating,
    # stays correct under "parallel" scheduling).
    xr_ref[:, 0:1, :] = jnp.zeros((Bb, 1, WCi), xr_ref.dtype)
    xr_ref[:, H + 1:H + 2, :] = jnp.zeros((Bb, 1, WCi), xr_ref.dtype)
    xr_ref[:, 1:H + 1, :] = x_ref[...]

    # ---- conv_1 + 1x1 shortcut: ONE (B_blk*H, 3*WCi) x (3*WCi, 2*WCo) matmul ----
    lhs1 = jnp.concatenate([xr_ref[:, kh:kh + H, :] for kh in range(K)], axis=2)
    lhs1 = lhs1.reshape(Bb * H, K * WCi).astype(jnp.bfloat16)
    y1 = jnp.dot(lhs1, w1p_ref[...],
                 preferred_element_type=jnp.float32) + b1p_ref[...]
    h1 = _leaky_relu(y1[:, :WCo])          # conv_1 activation  (B_blk*H, WCo) f32
    ident = y1[:, WCo:]                    # 1x1 shortcut branch (B_blk*H, WCo) f32

    h1r_ref[:, 0:1, :] = jnp.zeros((Bb, 1, WCo), h1r_ref.dtype)
    h1r_ref[:, H + 1:H + 2, :] = jnp.zeros((Bb, 1, WCo), h1r_ref.dtype)
    h1r_ref[:, 1:H + 1, :] = h1.reshape(Bb, H, WCo)

    # ---- conv_2: ONE (B_blk*H, 3*WCo) x (3*WCo, WCo) matmul ---------------------
    lhs2 = jnp.concatenate([h1r_ref[:, kh:kh + H, :] for kh in range(K)], axis=2)
    lhs2 = lhs2.reshape(Bb * H, K * WCo).astype(jnp.bfloat16)
    y2 = jnp.dot(lhs2, w2p_ref[...],
                 preferred_element_type=jnp.float32) + b2_ref[...]
    h2 = _leaky_relu(y2)

    # ---- residual add, lane-dense store ----------------------------------------
    o_ref[...] = (h2 + ident).reshape(Bb, H, WCo).astype(o_ref.dtype)


# ----------------------------------------------------------------------------- #
# Weight packing (run ONCE at parameter-init time, not per forward call).
# ----------------------------------------------------------------------------- #
def _band_weights(w_hwio, W):
    """Fold a (3, 3, Ci, Co) conv kernel into 3 banded (W*Ci, W*Co) matrices.

    band[kh][wp*Ci + ci, wo*Co + co] = w[kh, wp - wo + 1, ci, co] if |wp-wo| <= 1
    Horizontal zero-padding is realized by the band clipping at the image borders.
    """
    Kh, Kw, Ci, Co = w_hwio.shape
    dw = jnp.arange(W)[:, None] - jnp.arange(W)[None, :] + 1        # (Wp, Wo)
    valid = (dw >= 0) & (dw <= Kw - 1)
    taps = w_hwio[:, jnp.clip(dw, 0, Kw - 1), :, :]                 # (Kh,Wp,Wo,Ci,Co)
    taps = jnp.where(valid[None, :, :, None, None], taps, 0.0)
    return taps.transpose(0, 1, 3, 2, 4).reshape(Kh, W * Ci, W * Co)


def _blockdiag_1x1(wsc, W):
    """(Ci, Co) 1x1 conv weights -> block-diagonal (W*Ci, W*Co)."""
    Ci, Co = wsc.shape
    eye = jnp.eye(W, dtype=wsc.dtype)
    return (eye[:, None, :, None] * wsc[None, :, None, :]).reshape(W * Ci, W * Co)


def pack_params(params, W, compute_dtype=jnp.bfloat16):
    """Build the K-fused / N-fused packed weights once (cache across forwards)."""
    w1, b1, w2, b2, wsc, bsc = params
    Cin, Cout = w1.shape[2], w1.shape[3]
    WCi, WCo = W * Cin, W * Cout

    # conv1: stack the 3 vertical taps along K -> (3*WCi, WCo)
    w1b = _band_weights(w1, W).reshape(K * WCi, WCo)
    # 1x1 shortcut shares the unshifted (kh=1) lhs rows -> fuse along N with zero
    # rows in the kh=0 / kh=2 bands -> combined (3*WCi, 2*WCo), fills N=256.
    wscb = jnp.zeros((K * WCi, WCo), jnp.float32).at[WCi:2 * WCi, :].set(
        _blockdiag_1x1(wsc, W))
    w1p = jnp.concatenate([w1b, wscb], axis=1)                   # (3*WCi, 2*WCo)
    b1p = jnp.concatenate([jnp.tile(b1, (1, W)),
                           jnp.tile(bsc, (1, W))], axis=1)       # (1, 2*WCo)

    # conv2: (3*WCo, WCo)
    w2p = _band_weights(w2, W).reshape(K * WCo, WCo)
    b2r = jnp.tile(b2, (1, W))                                   # (1, WCo)

    return (w1p.astype(compute_dtype), b1p.astype(jnp.float32),
            w2p.astype(compute_dtype), b2r.astype(jnp.float32))


def _pick_batch_block(B, H):
    """Largest divisor of B with B_blk*H <= 256 (fill MXU M, amortize grid steps)."""
    bb = max(1, min(B, max(1, 256 // H)))
    while B % bb != 0:
        bb -= 1
    return bb


# ----------------------------------------------------------------------------- #
# Forward wrapper (cheap per-call path: transpose/reshape of x + pallas_call).
# ----------------------------------------------------------------------------- #
def res_block_up(x_nchw, packed):
    """Pallas forward. x_nchw: (B, Cin, H, W) f32 -> (B, Cout, H, W) f32."""
    w1p, b1p, w2p, b2r = packed
    B, Cin, H, W = x_nchw.shape
    WCi = W * Cin
    WCo = b2r.shape[1]
    Cout = WCo // W

    # NCHW -> rows x (width*channels); padding lives entirely in VMEM.
    x_rows = jnp.transpose(x_nchw, (0, 2, 3, 1)).reshape(B, H, WCi)
    x_rows = x_rows.astype(jnp.float32)

    Bb = _pick_batch_block(B, H)            # batch block stacked along matmul M
    grid = (B // Bb,)

    grid_spec = pltpu.PrefetchScalarGridSpec(
        num_scalar_prefetch=0,
        grid=grid,
        in_specs=[
            pl.BlockSpec((Bb, H, WCi), lambda b: (b, 0, 0)),
            pl.BlockSpec((K * WCi, 2 * WCo), lambda b: (0, 0)),
            pl.BlockSpec((1, 2 * WCo), lambda b: (0, 0)),
            pl.BlockSpec((K * WCo, WCo), lambda b: (0, 0)),
            pl.BlockSpec((1, WCo), lambda b: (0, 0)),
        ],
        out_specs=pl.BlockSpec((Bb, H, WCo), lambda b: (b, 0, 0)),
        scratch_shapes=[
            pltpu.VMEM((Bb, H + 2, WCi), jnp.float32),
            pltpu.VMEM((Bb, H + 2, WCo), jnp.float32),
        ],
    )

    out_rows = pl.pallas_call(
        resblockup_kernel,
        out_shape=jax.ShapeDtypeStruct((B, H, WCo), jnp.float32),
        grid_spec=grid_spec,
        compiler_params=pltpu.CompilerParams(
            dimension_semantics=("parallel",)),
    )(x_rows, w1p, b1p, w2p, b2r)

    # rows x (width*channels) -> NHWC -> NCHW to match PyTorch.
    return jnp.transpose(out_rows.reshape(B, H, W, Cout), (0, 3, 1, 2))


# ----------------------------------------------------------------------------- #
# Init + plain-JAX reference (mirrors the PyTorch ResBlockUp forward).
# ----------------------------------------------------------------------------- #
def init_params(key, in_chl, out_chl):
    """Deterministic synthetic init (shapes from ResBlockUp.__init__), HWIO layout."""
    k1, k2, k3, k4, k5, k6 = jax.random.split(key, 6)

    def u(k, shape, fan_in):
        bound = 1.0 / math.sqrt(fan_in)
        return jax.random.uniform(k, shape, jnp.float32, -bound, bound)

    w1 = u(k1, (3, 3, in_chl, out_chl), in_chl * 9)
    b1 = u(k2, (1, out_chl), in_chl * 9)
    w2 = u(k3, (3, 3, out_chl, out_chl), out_chl * 9)
    b2 = u(k4, (1, out_chl), out_chl * 9)
    wsc = u(k5, (in_chl, out_chl), in_chl)
    bsc = u(k6, (1, out_chl), in_chl)
    return (w1, b1, w2, b2, wsc, bsc)


def reference(x_nchw, params):
    """Plain-JAX reference of the PyTorch forward (for verification)."""
    w1, b1, w2, b2, wsc, bsc = params
    x = jnp.transpose(x_nchw, (0, 2, 3, 1))
    dn = ("NHWC", "HWIO", "NHWC")

    def conv(inp, w, b, pad):
        y = lax.conv_general_dilated(inp, w, (1, 1), pad, dimension_numbers=dn)
        return y + b.reshape(1, 1, 1, -1)

    lrelu = lambda v: jnp.where(v >= 0, v, NEG_SLOPE * v)
    ident = conv(x, wsc.reshape(1, 1, *wsc.shape), bsc, "VALID")
    h = lrelu(conv(x, w1, b1, "SAME"))
    h = lrelu(conv(h, w2, b2, "SAME"))
    return jnp.transpose(h + ident, (0, 3, 1, 2))


if __name__ == "__main__":
    key = jax.random.PRNGKey(0)
    kx, kp = jax.random.split(key)

    B, in_chl, out_chl, H, W = 2, 4, 8, 16, 16
    x = jax.random.normal(kx, (B, in_chl, H, W), jnp.float32)     # NCHW like PyTorch
    params = init_params(kp, in_chl, out_chl)

    # Packed weights are built ONCE here (review item 4), not on every forward.
    packed = jax.block_until_ready(pack_params(params, W))

    fwd = jax.jit(res_block_up)
    out = jax.block_until_ready(fwd(x, packed))
    ref = jax.block_until_ready(reference(x, params))

    assert out.shape == (B, out_chl, H, W)
    # bf16 MXU operands (kernel) vs f32 reference conv: agreement is limited by
    # bf16 operand rounding (~1e-3 abs at these magnitudes); 1e-2 still catches
    # any real indexing/weight-packing bug (those produce O(1) errors).
    np.testing.assert_allclose(np.asarray(out), np.asarray(ref),
                               rtol=1e-2, atol=1e-2)
    print("KERNEL_OK")
</pallas_src>

<mosaic_0001>
module attributes {stable_mosaic.version = 11 : i64} {
  func.func @resblockup_kernel(%arg0: i32, %arg1: memref<2x16x64xf32, #tpu.memory_space<vmem>>, %arg2: memref<192x256xbf16, #tpu.memory_space<vmem>>, %arg3: memref<1x256xf32, #tpu.memory_space<vmem>>, %arg4: memref<384x128xbf16, #tpu.memory_space<vmem>>, %arg5: memref<1x128xf32, #tpu.memory_space<vmem>>, %arg6: memref<2x16x128xf32, #tpu.memory_space<vmem>>, %arg7: memref<2x18x64xf32, #tpu.memory_space<vmem>>, %arg8: memref<2x18x128xf32, #tpu.memory_space<vmem>>) attributes {dimension_semantics = [#tpu.dimension_semantics<parallel>], iteration_bounds = array<i64: 1>, scalar_prefetch = 0 : i64, scratch_operands = 2 : i64, tpu.core_type = #tpu.core_type<tc>, window_params = [{transform_indices = @transform_0, window_bounds = array<i64: 2, 16, 64>}, {pipeline_mode = #tpu.pipeline_mode<synchronous>, transform_indices = @transform_1, window_bounds = array<i64: 192, 256>}, {pipeline_mode = #tpu.pipeline_mode<synchronous>, transform_indices = @transform_2, window_bounds = array<i64: 1, 256>}, {pipeline_mode = #tpu.pipeline_mode<synchronous>, transform_indices = @transform_3, window_bounds = array<i64: 384, 128>}, {pipeline_mode = #tpu.pipeline_mode<synchronous>, transform_indices = @transform_4, window_bounds = array<i64: 1, 128>}, {transform_indices = @transform_5, window_bounds = array<i64: 2, 16, 128>}]} {
    %cst = arith.constant 0.000000e+00 : f32
    %0 = vector.broadcast %cst : f32 to vector<2x1x64xf32>
    %c0 = arith.constant 0 : index
    %c0_0 = arith.constant 0 : index
    %c0_1 = arith.constant 0 : index
    %1 = vector.load %arg7[%c0, %c0_0, %c0_1] : memref<2x18x64xf32, #tpu.memory_space<vmem>>, vector<2x1x64xf32>
    tpu.vector_store %arg7[%c0, %c0_0, %c0_1], %0 {strides = array<i32>} : memref<2x18x64xf32, #tpu.memory_space<vmem>>, vector<2x1x64xf32>,
    %cst_2 = arith.constant 0.000000e+00 : f32
    %2 = vector.broadcast %cst_2 : f32 to vector<2x1x64xf32>
    %c0_3 = arith.constant 0 : index
    %c17 = arith.constant 17 : index
    %c0_4 = arith.constant 0 : index
    %3 = vector.load %arg7[%c0_3, %c17, %c0_4] : memref<2x18x64xf32, #tpu.memory_space<vmem>>, vector<2x1x64xf32>
    tpu.vector_store %arg7[%c0_3, %c17, %c0_4], %2 {strides = array<i32>} : memref<2x18x64xf32, #tpu.memory_space<vmem>>, vector<2x1x64xf32>,
    %c0_5 = arith.constant 0 : index
    %c0_6 = arith.constant 0 : index
    %c0_7 = arith.constant 0 : index
    %4 = vector.load %arg1[%c0_5, %c0_6, %c0_7] : memref<2x16x64xf32, #tpu.memory_space<vmem>>, vector<2x16x64xf32>
    %c0_8 = arith.constant 0 : index
    %c1 = arith.constant 1 : index
    %c0_9 = arith.constant 0 : index
    %5 = vector.load %arg7[%c0_8, %c1, %c0_9] : memref<2x18x64xf32, #tpu.memory_space<vmem>>, vector<2x16x64xf32>
    tpu.vector_store %arg7[%c0_8, %c1, %c0_9], %4 {strides = array<i32>} : memref<2x18x64xf32, #tpu.memory_space<vmem>>, vector<2x16x64xf32>,
    %c0_10 = arith.constant 0 : index
    %c0_11 = arith.constant 0 : index
    %c0_12 = arith.constant 0 : index
    %6 = vector.load %arg7[%c0_10, %c0_11, %c0_12] : memref<2x18x64xf32, #tpu.memory_space<vmem>>, vector<2x16x64xf32>
    %c0_13 = arith.constant 0 : index
    %c1_14 = arith.constant 1 : index
    %c0_15 = arith.constant 0 : index
    %7 = vector.load %arg7[%c0_13, %c1_14, %c0_15] : memref<2x18x64xf32, #tpu.memory_space<vmem>>, vector<2x16x64xf32>
    %c0_16 = arith.constant 0 : index
    %c2 = arith.constant 2 : index
    %c0_17 = arith.constant 0 : index
    %8 = vector.load %arg7[%c0_16, %c2, %c0_17] : memref<2x18x64xf32, #tpu.memory_space<vmem>>, vector<2x16x64xf32>
    %9 = tpu.concatenate %6, %7, %8 in 2 : vector<2x16x64xf32>, vector<2x16x64xf32>, vector<2x16x64xf32> -> vector<2x16x192xf32>
    %10 = vector.shape_cast %9 : vector<2x16x192xf32> to vector<32x192xf32>
    %11 = arith.truncf %10 : vector<32x192xf32> to vector<32x192xbf16>
    %c0_18 = arith.constant 0 : index
    %c0_19 = arith.constant 0 : index
    %12 = vector.load %arg2[%c0_18, %c0_19] : memref<192x256xbf16, #tpu.memory_space<vmem>>, vector<192x256xbf16>
    %cst_20 = arith.constant dense<0.000000e+00> : vector<32x256xf32>
    %13 = tpu.matmul %11, %12, %cst_20 {dimension_numbers = #tpu.dot_dimension_numbers<[1], [0], [0], [1], [0, 0, 1, 1], [], []>} : vector<32x192xbf16>, vector<192x256xbf16>, vector<32x256xf32> -> vector<32x256xf32>
    %c0_21 = arith.constant 0 : index
    %c0_22 = arith.constant 0 : index
    %14 = vector.load %arg3[%c0_21, %c0_22] : memref<1x256xf32, #tpu.memory_space<vmem>>, vector<1x256xf32>
    %15 = vector.broadcast %14 : vector<1x256xf32> to vector<32x256xf32>
    %16 = arith.addf %13, %15 : vector<32x256xf32>
    %17 = vector.extract_strided_slice %16 {offsets = [0, 0], sizes = [32, 128], strides = [1, 1]} : vector<32x256xf32> to vector<32x128xf32>
    %cst_23 = arith.constant 2.000000e-01 : f32
    %18 = vector.broadcast %cst_23 : f32 to vector<32x128xf32>
    %19 = arith.mulf %18, %17 : vector<32x128xf32>
    %20 = arith.maximumf %17, %19 : vector<32x128xf32>
    %21 = vector.extract_strided_slice %16 {offsets = [0, 128], sizes = [32, 128], strides = [1, 1]} : vector<32x256xf32> to vector<32x128xf32>
    %cst_24 = arith.constant 0.000000e+00 : f32
    %22 = vector.broadcast %cst_24 : f32 to vector<2x1x128xf32>
    %c0_25 = arith.constant 0 : index
    %c0_26 = arith.constant 0 : index
    %c0_27 = arith.constant 0 : index
    %23 = vector.load %arg8[%c0_25, %c0_26, %c0_27] : memref<2x18x128xf32, #tpu.memory_space<vmem>>, vector<2x1x128xf32>
    tpu.vector_store %arg8[%c0_25, %c0_26, %c0_27], %22 {strides = array<i32>} : memref<2x18x128xf32, #tpu.memory_space<vmem>>, vector<2x1x128xf32>,
    %cst_28 = arith.constant 0.000000e+00 : f32
    %24 = vector.broadcast %cst_28 : f32 to vector<2x1x128xf32>
    %c0_29 = arith.constant 0 : index
    %c17_30 = arith.constant 17 : index
    %c0_31 = arith.constant 0 : index
    %25 = vector.load %arg8[%c0_29, %c17_30, %c0_31] : memref<2x18x128xf32, #tpu.memory_space<vmem>>, vector<2x1x128xf32>
    tpu.vector_store %arg8[%c0_29, %c17_30, %c0_31], %24 {strides = array<i32>} : memref<2x18x128xf32, #tpu.memory_space<vmem>>, vector<2x1x128xf32>,
    %26 = vector.shape_cast %20 : vector<32x128xf32> to vector<2x16x128xf32>
    %c0_32 = arith.constant 0 : index
    %c1_33 = arith.constant 1 : index
    %c0_34 = arith.constant 0 : index
    %27 = vector.load %arg8[%c0_32, %c1_33, %c0_34] : memref<2x18x128xf32, #tpu.memory_space<vmem>>, vector<2x16x128xf32>
    tpu.vector_store %arg8[%c0_32, %c1_33, %c0_34], %26 {strides = array<i32>} : memref<2x18x128xf32, #tpu.memory_space<vmem>>, vector<2x16x128xf32>,
    %c0_35 = arith.constant 0 : index
    %c0_36 = arith.constant 0 : index
    %c0_37 = arith.constant 0 : index
    %28 = vector.load %arg8[%c0_35, %c0_36, %c0_37] : memref<2x18x128xf32, #tpu.memory_space<vmem>>, vector<2x16x128xf32>
    %c0_38 = arith.constant 0 : index
    %c1_39 = arith.constant 1 : index
    %c0_40 = arith.constant 0 : index
    %29 = vector.load %arg8[%c0_38, %c1_39, %c0_40] : memref<2x18x128xf32, #tpu.memory_space<vmem>>, vector<2x16x128xf32>
    %c0_41 = arith.constant 0 : index
    %c2_42 = arith.constant 2 : index
    %c0_43 = arith.constant 0 : index
    %30 = vector.load %arg8[%c0_41, %c2_42, %c0_43] : memref<2x18x128xf32, #tpu.memory_space<vmem>>, vector<2x16x128xf32>
    %31 = tpu.concatenate %28, %29, %30 in 2 : vector<2x16x128xf32>, vector<2x16x128xf32>, vector<2x16x128xf32> -> vector<2x16x384xf32>
    %32 = vector.shape_cast %31 : vector<2x16x384xf32> to vector<32x384xf32>
    %33 = arith.truncf %32 : vector<32x384xf32> to vector<32x384xbf16>
    %c0_44 = arith.constant 0 : index
    %c0_45 = arith.constant 0 : index
    %34 = vector.load %arg4[%c0_44, %c0_45] : memref<384x128xbf16, #tpu.memory_space<vmem>>, vector<384x128xbf16>
    %cst_46 = arith.constant dense<0.000000e+00> : vector<32x128xf32>
    %35 = tpu.matmul %33, %34, %cst_46 {dimension_numbers = #tpu.dot_dimension_numbers<[1], [0], [0], [1], [0, 0, 1, 1], [], []>} : vector<32x384xbf16>, vector<384x128xbf16>, vector<32x128xf32> -> vector<32x128xf32>
    %c0_47 = arith.constant 0 : index
    %c0_48 = arith.constant 0 : index
    %36 = vector.load %arg5[%c0_47, %c0_48] : memref<1x128xf32, #tpu.memory_space<vmem>>, vector<1x128xf32>
    %37 = vector.broadcast %36 : vector<1x128xf32> to vector<32x128xf32>
    %38 = arith.addf %35, %37 : vector<32x128xf32>
    %cst_49 = arith.constant 2.000000e-01 : f32
    %39 = vector.broadcast %cst_49 : f32 to vector<32x128xf32>
    %40 = arith.mulf %39, %38 : vector<32x128xf32>
    %41 = arith.maximumf %38, %40 : vector<32x128xf32>
    %42 = arith.addf %41, %21 : vector<32x128xf32>
    %43 = vector.shape_cast %42 : vector<32x128xf32> to vector<2x16x128xf32>
    %c0_50 = arith.constant 0 : index
    %c0_51 = arith.constant 0 : index
    %c0_52 = arith.constant 0 : index
    %44 = vector.load %arg6[%c0_50, %c0_51, %c0_52] : memref<2x16x128xf32, #tpu.memory_space<vmem>>, vector<2x16x128xf32>
    tpu.vector_store %arg6[%c0_50, %c0_51, %c0_52], %43 {strides = array<i32>} : memref<2x16x128xf32, #tpu.memory_space<vmem>>, vector<2x16x128xf32>,
    return
  }
  func.func @transform_0(%arg0: i32) -> (i32, i32, i32) {
    %c0_i32 = arith.constant 0 : i32
    %c0_i32_0 = arith.constant 0 : i32
    %c0_i32_1 = arith.constant 0 : i32
    return %arg0, %c0_i32, %c0_i32_0 : i32, i32, i32
  }
  func.func @transform_1(%arg0: i32) -> (i32, i32) {
    %c0_i32 = arith.constant 0 : i32
    %c0_i32_0 = arith.constant 0 : i32
    %c0_i32_1 = arith.constant 0 : i32
    return %c0_i32, %c0_i32_0 : i32, i32
  }
  func.func @transform_2(%arg0: i32) -> (i32, i32) {
    %c0_i32 = arith.constant 0 : i32
    %c0_i32_0 = arith.constant 0 : i32
    %c0_i32_1 = arith.constant 0 : i32
    return %c0_i32, %c0_i32_0 : i32, i32
  }
  func.func @transform_3(%arg0: i32) -> (i32, i32) {
    %c0_i32 = arith.constant 0 : i32
    %c0_i32_0 = arith.constant 0 : i32
    %c0_i32_1 = arith.constant 0 : i32
    return %c0_i32, %c0_i32_0 : i32, i32
  }
  func.func @transform_4(%arg0: i32) -> (i32, i32) {
    %c0_i32 = arith.constant 0 : i32
    %c0_i32_0 = arith.constant 0 : i32
    %c0_i32_1 = arith.constant 0 : i32
    return %c0_i32, %c0_i32_0 : i32, i32
  }
  func.func @transform_5(%arg0: i32) -> (i32, i32, i32) {
    %c0_i32 = arith.constant 0 : i32
    %c0_i32_0 = arith.constant 0 : i32
    %c0_i32_1 = arith.constant 0 : i32
    return %arg0, %c0_i32, %c0_i32_0 : i32, i32, i32
  }
}

</mosaic_0001>

<bundles_post_ra>
// kernel: res_block_up.1
= control target key start
LH: loop header
LB: loop body
LE: loop exit
PB: predicated region body
PF: predicated region fallthrough
CT: control target
= control target key end

     0   :  { %vm30_vm0 = vcmask 523264   ;;  %vm21_vm1 = vcmask 516096   ;;  %v875_v3 = vmov 0.0   ;;  %s876_s18 = smov 64   ;;  %s1179_s0 = inlined_call_operand.vmem [shape: f32[2,16,64], index: 0, kind: input, shape index: {}]   ;;  %s1180_s1 = inlined_call_operand.vmem [shape: bf16[192,256], index: 1, kind: input, shape index: {}]   ;;  %s1181_s3 = inlined_call_operand.vmem [shape: bf16[384,128], index: 3, kind: input, shape index: {}]   ;;  %s1182_s4 = inlined_call_operand.vmem [shape: f32[1,128], index: 4, kind: input, shape index: {}]   ;;  %s1183_s2 = inlined_call_operand.vmem [shape: f32[1,256], index: 2, kind: input, shape index: {}]   ;;  %s1184_s5 = inlined_call_operand.vmem [shape: f32[2,16,128], index: 5, kind: output, shape index: {}]  }
   0x1   :  { %v26_v0 = vld [vmem:[%s1179_s0] sm:$0xff]  ;;  %v27_v1 = vld [vmem:[%s1179_s0 + $0x8] sm:$0xff]  ;;  %v28_v2 = vld [vmem:[%s1179_s0 + $0x10] sm:$0xff]  ;;  %24 = vst.msk [vmem:[#allocation2 + $0x11] sm:$0x1] %vm21_vm1, %v875_v3 }
   0x2   :  { %31 = vst.msk [vmem:[#allocation2 + $0x1] sm:$0xff] %vm30_vm0, %v26_v0  ;;  %v29_v4 = vld [vmem:[%s1179_s0 + $0x18] sm:$0xff]  ;;  %v668_v5 = vld [vmem:[%s1180_s1 + $0x70] sm:$0xf]  ;;  %v820_v8 = vld [vmem:[%s1180_s1 + $0x74] sm:$0xf] }
   0x3   :  { %v821_v6 = vld [vmem:[%s1180_s1 + $0x74] sm:$0xf0]  ;;  %32 = vst.msk [vmem:[#allocation2 + $0x9] sm:$0xff] %vm30_vm0, %v27_v1  ;;  %v670_v9 = vld [vmem:[%s1180_s1 + $0x78] sm:$0xf0] }
   0x4   :  { %v669_v7 = vor.u32 %v821_v6, %v668_v5  ;;  %33 = vst.msk [vmem:[#allocation2 + $0x19] sm:$0xff] %vm30_vm0, %v28_v2  ;;  %v673_v10 = vor.u32 %v820_v8, %v670_v9  ;;  %v660_v11 = vld [vmem:[%s1180_s1 + $0x60] sm:$0xf]  ;;  %v819_v12 = vld [vmem:[%s1180_s1 + $0x64] sm:$0xf0] }
   0x5   :  { %34 = vst.msk [vmem:[#allocation2 + $0x21] sm:$0xff] %vm30_vm0, %v29_v4  ;;  %v661_v13 = vor.u32 %v819_v12, %v660_v11  ;;  %v818_v14 = vld [vmem:[%s1180_s1 + $0x64] sm:$0xf]  ;;  %v662_v15 = vld [vmem:[%s1180_s1 + $0x68] sm:$0xf0] }
   0x6   :  { %227 = vmatpush.bf16.msra.mxu0 %v669_v7  ;;  %265 = vmatpush.bf16.msra.mxu2 %v673_v10  ;;  %v665_v16 = vor.u32 %v818_v14, %v662_v15  ;;  %v652_v17 = vld [vmem:[%s1180_s1 + $0x50] sm:$0xf]  ;;  %v817_v18 = vld [vmem:[%s1180_s1 + $0x54] sm:$0xf0]  ;;  %v816_v19 = vld [vmem:[%s1180_s1 + $0x54] sm:$0xf] }
   0x7   :  { %v654_v20 = vld [vmem:[%s1180_s1 + $0x58] sm:$0xf0]  ;;  %v700_v21 = vld [vmem:[%s1180_s1 + $0xb0] sm:$0xf]  ;;  %v829_v22 = vld [vmem:[%s1180_s1 + $0xb4] sm:$0xf0]  ;;  %v653_v25 = vor.u32 %v817_v18, %v652_v17 }
   0x8   :  { %v701_v23 = vor.u32 %v829_v22, %v700_v21  ;;  %v644_v26 = vld [vmem:[%s1180_s1 + $0x40] sm:$0xf]  ;;  %v657_v29 = vor.u32 %v816_v19, %v654_v20  ;;  %v815_v30 = vld [vmem:[%s1180_s1 + $0x44] sm:$0xf0]  ;;  %v814_v33 = vld [vmem:[%s1180_s1 + $0x44] sm:$0xf] }
   0x9   :  { %v39_v24 = vld [vmem:[#allocation2 + $0x1] sm:$0xff]  ;;  %v646_v34 = vld [vmem:[%s1180_s1 + $0x48] sm:$0xf0]  ;;  %v636_v37 = vld [vmem:[%s1180_s1 + $0x30] sm:$0xf]  ;;  %v645_v39 = vor.u32 %v815_v30, %v644_v26 }
   0xa   :  { %228 = vmatpush.bf16.msra.mxu0 %v661_v13  ;;  %v692_v27 = vld [vmem:[%s1180_s1 + $0xa0] sm:$0xf]  ;;  %v40_v28 = vld [vmem:[#allocation2 + $0x9] sm:$0xff]  ;;  %266 = vmatpush.bf16.msra.mxu2 %v665_v16  ;;  %v825_v40 = vld [vmem:[%s1180_s1 + $0x94] sm:$0xf0]  ;;  %v649_v44 = vor.u32 %v814_v33, %v646_v34 }
   0xb   :  { %250 = vmatpush.bf16.msra.mxu1 %v701_v23  ;;  %v827_v31 = vld [vmem:[%s1180_s1 + $0xa4] sm:$0xf0]  ;;  %v864_v32 = vpack.i.bf16 %v40_v28, %v39_v24  ;;  %v41_v36 = vld [vmem:[#allocation2 + $0x19] sm:$0xff]  ;;  %v684_v38 = vld [vmem:[%s1180_s1 + $0x90] sm:$0xf] }
   0xc   :  { %v693_v35 = vor.u32 %v827_v31, %v692_v27  ;;  %v828_v41 = vld [vmem:[%s1180_s1 + $0xb4] sm:$0xf]  ;;  %v702_v42 = vld [vmem:[%s1180_s1 + $0xb8] sm:$0xf0]  ;;  %v42_v43 = vld [vmem:[#allocation2 + $0x21] sm:$0xff]  ;;  %v685_v47 = vor.u32 %v825_v40, %v684_v38 }
   0xd   :  { %865 = vrot.lane.b32.xlu0 %v864_v32, %s876_s18  ;;  %v813_v45 = vld [vmem:[%s1180_s1 + $0x34] sm:$0xf0]  ;;  %v812_v46 = vld [vmem:[%s1180_s1 + $0x34] sm:$0xf]  ;;  %v705_v48 = vor.u32 %v828_v41, %v702_v42  ;;  %v638_v49 = vld [vmem:[%s1180_s1 + $0x38] sm:$0xf0]  ;;  %v869_v54 = vpack.i.bf16 %v42_v43, %v41_v36 }
   0xe   :  { %229 = vmatpush.bf16.msra.mxu0 %v653_v25  ;;  %267 = vmatpush.bf16.msra.mxu2 %v657_v29  ;;  %v676_v50 = vld [vmem:[%s1180_s1 + $0x80] sm:$0xf]  ;;  %v823_v51 = vld [vmem:[%s1180_s1 + $0x84] sm:$0xf0]  ;;  %v826_v52 = vld [vmem:[%s1180_s1 + $0xa4] sm:$0xf]  ;;  %v637_v55 = vor.u32 %v813_v45, %v636_v37  ;;  %v641_v58 = vor.u32 %v812_v46, %v638_v49 }
   0xf   :  { %251 = vmatpush.bf16.msra.mxu1 %v693_v35  ;;  %288 = vmatpush.bf16.msra.mxu3 %v705_v48  ;;  %v694_v53 = vld [vmem:[%s1180_s1 + $0xa8] sm:$0xf0]  ;;  %v628_v56 = vld [vmem:[%s1180_s1 + $0x20] sm:$0xf]  ;;  %v811_v59 = vld [vmem:[%s1180_s1 + $0x24] sm:$0xf0]  ;;  %v677_v60 = vor.u32 %v823_v51, %v676_v50 }
  0x10   :  { %v697_v57 = vor.u32 %v826_v52, %v694_v53  ;;  %v43_v61 = vld [vmem:[#allocation2 + $0x2] sm:$0xff]  ;;  %v44_v62 = vld [vmem:[#allocation2 + $0xa] sm:$0xff]  ;;  %22 = vst.msk [vmem:[#allocation2] sm:$0x1] %vm21_vm1, %v875_v3  ;;  %v629_v1 = vor.u32 %v811_v59, %v628_v56  ;;  %v809_v6 = vld [vmem:[%s1180_s1 + $0x14] sm:$0xf0] }
  0x11   :  { %v810_v63 = vld [vmem:[%s1180_s1 + $0x24] sm:$0xf]  ;;  %v630_v0 = vld [vmem:[%s1180_s1 + $0x28] sm:$0xf0]  ;;  %23 = vst.msk [vmem:[#allocation2 + $0x18] sm:$0x1] %vm21_vm1, %v875_v3  ;;  %v68_v2 = vpack.c.bf16 %v44_v62, %v43_v61 }
  0x12   :  { %230 = vmatpush.bf16.msra.mxu0 %v645_v39  ;;  %268 = vmatpush.bf16.msra.mxu2 %v649_v44  ;;  %25 = vst.msk [vmem:[#allocation2 + $0x29] sm:$0x1] %vm21_vm1, %v875_v3  ;;  %v633_v4 = vor.u32 %v810_v63, %v630_v0  ;;  %v620_v5 = vld [vmem:[%s1180_s1 + $0x10] sm:$0xf]  ;;  %v808_v7 = vld [vmem:[%s1180_s1 + $0x14] sm:$0xf] }
  0x13   :  { %252 = vmatpush.bf16.msra.mxu1 %v685_v47  ;;  %289 = vmatpush.bf16.msra.mxu3 %v697_v57  ;;  %311 = vst [vmem:[#allocation3] sm:$0x1] %v875_v3  ;;  %v622_v8 = vld [vmem:[%s1180_s1 + $0x18] sm:$0xf0]  ;;  %v621_v9 = vor.u32 %v809_v6, %v620_v5  ;;  %v824_v11 = vld [vmem:[%s1180_s1 + $0x94] sm:$0xf] }
  0x14   :  { %312 = vst [vmem:[#allocation3 + $0x18] sm:$0x1] %v875_v3  ;;  %v625_v10 = vor.u32 %v808_v7, %v622_v8  ;;  %v686_v12 = vld [vmem:[%s1180_s1 + $0x98] sm:$0xf0]  ;;  %v807_v14 = vld [vmem:[%s1180_s1 + $0x4] sm:$0xf0] }
  0x15   :  { %870 = vrot.lane.b32.xlu0 %v869_v54, %s876_s18  ;;  %313 = vst [vmem:[#allocation3 + $0x11] sm:$0x1] %v875_v3  ;;  %v689_v13 = vor.u32 %v824_v11, %v686_v12  ;;  %v806_v15 = vld [vmem:[%s1180_s1 + $0x4] sm:$0xf]  ;;  %v614_v17 = vld [vmem:[%s1180_s1 + $0x8] sm:$0xf0] }
  0x16   :  { %231 = vmatpush.bf16.msra.mxu0 %v637_v55  ;;  %269 = vmatpush.bf16.msra.mxu2 %v641_v58  ;;  %314 = vst [vmem:[#allocation3 + $0x29] sm:$0x1] %v875_v3  ;;  %v612_v3 = vld [vmem:[%s1180_s1] sm:$0xf]  ;;  %v822_v18 = vld [vmem:[%s1180_s1 + $0x84] sm:$0xf]  ;;  %v617_v20 = vor.u32 %v806_v15, %v614_v17 }
  0x17   :  { %253 = vmatpush.bf16.msra.mxu1 %v677_v60  ;;  %290 = vmatpush.bf16.msra.mxu3 %v689_v13  ;;  %v613_v16 = vor.u32 %v807_v14, %v612_v3  ;;  %v678_v19 = vld [vmem:[%s1180_s1 + $0x88] sm:$0xf0]  ;;  %v45_v22 = vld [vmem:[#allocation2 + $0x1a] sm:$0xff]  ;;  %v844_v28 = vld [vmem:[%s1181_s3 + $0x70] sm:$0xff] }
  0x18   :  { %v681_v21 = vor.u32 %v822_v18, %v678_v19  ;;  %v845_v25 = vld [vmem:[%s1181_s3 + $0x78] sm:$0xff]  ;;  %v35_v30 = vld [vmem:[#allocation2] sm:$0xff]  ;;  %v36_v31 = vld [vmem:[#allocation2 + $0x8] sm:$0xff] }
  0x19   :  { %v46_v23 = vld [vmem:[#allocation2 + $0x22] sm:$0xff]  ;;  %v837_v26 = vld [vmem:[%s1181_s3 + $0x38] sm:$0xff]  ;;  %v836_v46 = vld [vmem:[%s1181_s3 + $0x30] sm:$0xff] }
  0x1a   :  { %232 = vmatpush.bf16.msra.mxu0 %v629_v1  ;;  %706 = vmatmul.msk.bf16.vlgmr.msra.gmra.mxu1 %vm30_vm0, %v68_v2  ;;  %v70_v24 = vpack.c.bf16 %v46_v23, %v45_v22  ;;  %v853_v27 = vld [vmem:[%s1181_s3 + $0xb8] sm:$0xff]  ;;  %v38_v41 = vld [vmem:[#allocation2 + $0x20] sm:$0xff]  ;;  %v843_v45 = vld [vmem:[%s1181_s3 + $0x68] sm:$0xff] }
  0x1b   :  { %270 = vmatpush.bf16.msra.mxu2 %v633_v4  ;;  %291 = vmatpush.bf16.msra.mxu3 %v681_v21  ;;  %v37_v40 = vld [vmem:[#allocation2 + $0x18] sm:$0xff]  ;;  %v852_v47 = vld [vmem:[%s1181_s3 + $0xb0] sm:$0xff]  ;;  %v842_v48 = vld [vmem:[%s1181_s3 + $0x60] sm:$0xff] }
  0x1c   :  { %533 = vmatpush.bf16.msrb.mxu1 %v837_v26  ;;  %v835_v49 = vld [vmem:[%s1181_s3 + $0x28] sm:$0xff]  ;;  %v841_v51 = vld [vmem:[%s1181_s3 + $0x58] sm:$0xff]  ;;  %v834_v52 = vld [vmem:[%s1181_s3 + $0x20] sm:$0xff] }
  0x1d   :  { %v851_v50 = vld [vmem:[%s1181_s3 + $0xa8] sm:$0xff]  ;;  %v850_v53 = vld [vmem:[%s1181_s3 + $0xa0] sm:$0xff]  ;;  %v840_v54 = vld [vmem:[%s1181_s3 + $0x50] sm:$0xff] }
  0x1e   :  { %233 = vmatpush.bf16.msra.mxu0 %v621_v9  ;;  %708 = vmatmul.msk.bf16.vlgmr.msra.gmra.mxu3 %vm30_vm0, %v68_v2  ;;  %v833_v55 = vld [vmem:[%s1181_s3 + $0x18] sm:$0xff]  ;;  %v839_v57 = vld [vmem:[%s1181_s3 + $0x48] sm:$0xff]  ;;  %v832_v58 = vld [vmem:[%s1181_s3 + $0x10] sm:$0xff] }
  0x1f   :  { %271 = vmatpush.bf16.msra.mxu2 %v625_v10  ;;  %552 = vmatpush.bf16.msrb.mxu3 %v845_v25  ;;  %v849_v56 = vld [vmem:[%s1181_s3 + $0x98] sm:$0xff]  ;;  %v848_v59 = vld [vmem:[%s1181_s3 + $0x90] sm:$0xff]  ;;  %v838_v60 = vld [vmem:[%s1181_s3 + $0x40] sm:$0xff] }
  0x20   :  { %534 = vmatpush.bf16.msrb.mxu1 %v836_v46  ;;  %v831_v61 = vld [vmem:[%s1181_s3 + $0x8] sm:$0xff]  ;;  %v830_v63 = vld [vmem:[%s1181_s3] sm:$0xff] }
  0x21   :  { %v847_v62 = vld [vmem:[%s1181_s3 + $0x88] sm:$0xff]  ;;  %v846_v0 = vld [vmem:[%s1181_s3 + $0x80] sm:$0xff] }
  0x22   :  { %234 = vmatpush.bf16.msra.mxu0 %v613_v16  ;;  %v95_v1 = vld [vmem:[%s1183_s2] sm:$0x3] }
  0x23   :  { %272 = vmatpush.bf16.msra.mxu2 %v617_v20  ;;  %553 = vmatpush.bf16.msrb.mxu3 %v844_v28  ;;  %v97_v4 = vperm.slane %v95_v1, 0 }
  0x24   :  { %535 = vmatpush.bf16.msrb.mxu1 %v835_v49 }
  0x26   :  { %571 = vmatpush.bf16.msrb.mxu0 %v853_v27 }
  0x27   :  { %854 = vmatpush.bf16.msrb.mxu2 %v853_v27  ;;  %554 = vmatpush.bf16.msrb.mxu3 %v843_v45 }
  0x28   :  { %536 = vmatpush.bf16.msrb.mxu1 %v834_v52 }
  0x2a   :  { %707 = vmatmul.msk.bf16.gmra.mxu1 %vm30_vm0, %v70_v24  ;;  %572 = vmatpush.bf16.msrb.mxu0 %v852_v47 }
  0x2b   :  { %555 = vmatpush.bf16.msrb.mxu3 %v842_v48  ;;  %855 = vmatpush.bf16.msrb.mxu2 %v852_v47  ;;  %v874_v47 = vld [vmem:[%s1182_s4] ss:$0 sm:$0xff] }
  0x2c   :  { %537 = vmatpush.bf16.msrb.mxu1 %v833_v55 }
  0x2e   :  { %709 = vmatmul.msk.bf16.gmra.mxu3 %vm30_vm0, %v70_v24  ;;  %573 = vmatpush.bf16.msrb.mxu0 %v851_v50 }
  0x2f   :  { %556 = vmatpush.bf16.msrb.mxu3 %v841_v51  ;;  %856 = vmatpush.bf16.msrb.mxu2 %v851_v50  ;;  %v98_v50 = vperm.slane %v95_v1, 1 }
  0x30   :  { %538 = vmatpush.bf16.msrb.mxu1 %v832_v58 }
  0x32   :  { %574 = vmatpush.bf16.msrb.mxu0 %v850_v53 }
  0x33   :  { %557 = vmatpush.bf16.msrb.mxu3 %v840_v54  ;;  %857 = vmatpush.bf16.msrb.mxu2 %v850_v53 }
  0x34   :  { %539 = vmatpush.bf16.msrb.mxu1 %v831_v61 }
  0x36   :  { %575 = vmatpush.bf16.msrb.mxu0 %v849_v56 }
  0x37   :  { %558 = vmatpush.bf16.msrb.mxu3 %v839_v57  ;;  %858 = vmatpush.bf16.msrb.mxu2 %v849_v56 }
  0x38   :  { %540 = vmatpush.bf16.msrb.mxu1 %v830_v63 }
  0x3a   :  { %576 = vmatpush.bf16.msrb.mxu0 %v848_v59 }
  0x3b   :  { %559 = vmatpush.bf16.msrb.mxu3 %v838_v60  ;;  %859 = vmatpush.bf16.msrb.mxu2 %v848_v59 }
  0x3e   :  { %577 = vmatpush.bf16.msrb.mxu0 %v847_v62 }
  0x3f   :  { %860 = vmatpush.bf16.msrb.mxu2 %v847_v62 }
  0x42   :  { %578 = vmatpush.bf16.msrb.mxu0 %v846_v0 }
  0x43   :  { %861 = vmatpush.bf16.msrb.mxu2 %v846_v0 }
  0x7f   :  { %v866_v29 = vpop.permute.xlu0 %865 }
  0x80   :  { %v868_v32 = vunpack.i.h.bf16 %v866_v29  ;;  %v867_v33 = vunpack.i.l.bf16 %v866_v29 }
  0x82   :  { %v63_v34 = vsel %vm30_vm0, %v35_v30, %v867_v33  ;;  %v64_v35 = vsel %vm30_vm0, %v36_v31, %v868_v32 }
  0x83   :  { %v67_v36 = vpack.c.bf16 %v64_v35, %v63_v34 }
  0x85   :  { %235 = vmatmul.bf16.vlgmr.msra.gmra.mxu0 %v67_v36  ;;  %273 = vmatmul.bf16.vlgmr.msra.gmra.mxu2 %v67_v36 }
  0x87   :  { %v871_v37 = vpop.permute.xlu0 %870 }
  0x88   :  { %v873_v38 = vunpack.i.h.bf16 %v871_v37  ;;  %v872_v39 = vunpack.i.l.bf16 %v871_v37 }
  0x8a   :  { %v65_v42 = vsel %vm30_vm0, %v37_v40, %v872_v39  ;;  %v66_v43 = vsel %vm30_vm0, %v38_v41, %v873_v38 }
  0x8b   :  { %v69_v44 = vpack.c.bf16 %v66_v43, %v65_v42 }
  0x95   :  { %240 = vmatmul.bf16.gmra.mxu0 %v69_v44  ;;  %278 = vmatmul.bf16.gmra.mxu2 %v69_v44 }
  0x97   :  { %v255_v2 = vpop.f32.mrf.mxu1 }
  0x9f   :  { %v257_v9 = vpop.f32.mrf.mxu1 }
  0xa1   :  { %v293_v41 = vpop.f32.mrf.mxu3 }
  0xa7   :  { %v260_v15 = vpop.f32.mrf.mxu1 }
  0xa9   :  { %v295_v42 = vpop.f32.mrf.mxu3 }
  0xaf   :  { %v262_v30 = vpop.f32.mrf.mxu1 }
  0xb1   :  { %v298_v43 = vpop.f32.mrf.mxu3 }
  0xb9   :  { %v300_v45 = vpop.f32.mrf.mxu3 }
 0x102   :  { %v236_v5 = vpop.f32.mrf.mxu0 }
 0x103   :  { %v237_v6 = vadd.f32 %v236_v5, %v97_v4 }
 0x105   :  { %v256_v7 = vadd.f32 %v255_v2, %v237_v6 }
 0x107   :  { %v303_v8 = vmul.f32 0.2, %v256_v7 }
 0x108   :  { %v274_v44 = vpop.f32.mrf.mxu2 }
 0x109   :  { %v307_v10 = vmax.f32 %v256_v7, %v303_v8  ;;  %v275_v55 = vadd.f32 %v274_v44, %v98_v50 }
 0x10a   :  { %v238_v11 = vpop.f32.mrf.mxu0 }
 0x10b   :  { %315 = vst [vmem:[#allocation3 + $0x1] sm:$0xff] %v307_v10  ;;  %v239_v12 = vadd.f32 %v238_v11, %v97_v4  ;;  %v294_v60 = vadd.f32 %v293_v41, %v275_v55 }
 0x10d   :  { %v258_v13 = vadd.f32 %v257_v9, %v239_v12 }
 0x10f   :  { %v304_v3 = vmul.f32 0.2, %v258_v13 }
 0x110   :  { %v276_v46 = vpop.f32.mrf.mxu2 }
 0x111   :  { %v308_v14 = vmax.f32 %v258_v13, %v304_v3 }
 0x112   :  { %v241_v16 = vpop.f32.mrf.mxu0  ;;  %v319_v22 = vld [vmem:[#allocation3] sm:$0xff] }
 0x113   :  { %316 = vst [vmem:[#allocation3 + $0x9] sm:$0xff] %v308_v14  ;;  %v242_v17 = vadd.f32 %v241_v16, %v97_v4  ;;  %v332_v18 = vpack.c.bf16 %v308_v14, %v307_v10 }
 0x115   :  { %v261_v19 = vadd.f32 %v260_v15, %v242_v17  ;;  %560 = vmatmul.bf16.vlgmr.msrb.gmra.mxu3 %v332_v18 }
 0x117   :  { %v305_v20 = vmul.f32 0.2, %v261_v19 }
 0x118   :  { %v279_v54 = vpop.f32.mrf.mxu2 }
 0x119   :  { %v309_v21 = vmax.f32 %v261_v19, %v305_v20  ;;  %v280_v14 = vadd.f32 %v279_v54, %v98_v50 }
 0x11a   :  { %v243_v23 = vpop.f32.mrf.mxu0  ;;  %v320_v24 = vld [vmem:[#allocation3 + $0x8] sm:$0xff] }
 0x11b   :  { %v327_v25 = vld [vmem:[#allocation3 + $0x2] sm:$0xff]  ;;  %v328_v26 = vld [vmem:[#allocation3 + $0xa] sm:$0xff]  ;;  %317 = vst [vmem:[#allocation3 + $0x19] sm:$0xff] %v309_v21  ;;  %v244_v27 = vadd.f32 %v243_v23, %v97_v4  ;;  %v331_v28 = vpack.c.bf16 %v320_v24, %v319_v22  ;;  %v277_v4 = vadd.f32 %v276_v46, %v98_v50  ;;  %v299_v19 = vadd.f32 %v298_v43, %v280_v14 }
 0x11c   :  { %v333_v29 = vpack.c.bf16 %v328_v26, %v327_v25 }
 0x11d   :  { %v263_v31 = vadd.f32 %v262_v30, %v244_v27  ;;  %541 = vmatmul.bf16.vlgmr.msrb.gmra.mxu1 %v331_v28  ;;  %v296_v8 = vadd.f32 %v295_v42, %v277_v4 }
 0x11e   :  { %579 = vmatmul.bf16.vlgmr.msrb.gmra.mxu0 %v333_v29 }
 0x11f   :  { %v306_v32 = vmul.f32 0.2, %v263_v31 }
 0x120   :  { %v281_v5 = vpop.f32.mrf.mxu2 }
 0x121   :  { %v310_v33 = vmax.f32 %v263_v31, %v306_v32  ;;  %v282_v25 = vadd.f32 %v281_v5, %v98_v50 }
 0x122   :  { %v321_v35 = vld [vmem:[#allocation3 + $0x18] sm:$0xff] }
 0x123   :  { %318 = vst [vmem:[#allocation3 + $0x21] sm:$0xff] %v310_v33  ;;  %v335_v34 = vpack.c.bf16 %v310_v33, %v309_v21  ;;  %v301_v28 = vadd.f32 %v300_v45, %v282_v25 }
 0x125   :  { %565 = vmatmul.bf16.gmra.mxu3 %v335_v34 }
 0x12a   :  { %v322_v36 = vld [vmem:[#allocation3 + $0x20] sm:$0xff] }
 0x12b   :  { %v329_v37 = vld [vmem:[#allocation3 + $0x1a] sm:$0xff]  ;;  %v330_v38 = vld [vmem:[#allocation3 + $0x22] sm:$0xff]  ;;  %v334_v39 = vpack.c.bf16 %v322_v36, %v321_v35 }
 0x12c   :  { %v336_v40 = vpack.c.bf16 %v330_v38, %v329_v37 }
 0x12d   :  { %546 = vmatmul.bf16.gmra.mxu1 %v334_v39 }
 0x12e   :  { %584 = vmatmul.bf16.vlgmr.msrb.gmra.mxu2 %v336_v40 }
 0x198   :  { %v561_v48 = vpop.f32.mrf.mxu3 }
 0x19a   :  { %v542_v49 = vpop.f32.mrf.mxu1 }
 0x19b   :  { %v543_v51 = vadd.f32 %v874_v47, %v542_v49  ;;  %v580_v52 = vpop.f32.mrf.mxu0 }
 0x19d   :  { %v562_v53 = vadd.f32 %v561_v48, %v543_v51 }
 0x19f   :  { %v581_v56 = vadd.f32 %v580_v52, %v562_v53 }
 0x1a0   :  { %v563_v59 = vpop.f32.mrf.mxu3 }
 0x1a1   :  { %v590_v57 = vmul.f32 0.2, %v581_v56 }
 0x1a2   :  { %v544_v58 = vpop.f32.mrf.mxu1 }
 0x1a3   :  { %v594_v61 = vmax.f32 %v581_v56, %v590_v57  ;;  %v545_v62 = vadd.f32 %v874_v47, %v544_v58  ;;  %v582_v2 = vpop.f32.mrf.mxu0 }
 0x1a5   :  { %v598_v63 = vadd.f32 %v594_v61, %v294_v60  ;;  %v564_v0 = vadd.f32 %v563_v59, %v545_v62 }
 0x1a7   :  { %602 = vst [vmem:[%s1184_s5] sm:$0xff] %v598_v63  ;;  %v583_v1 = vadd.f32 %v582_v2, %v564_v0 }
 0x1a8   :  { %v566_v11 = vpop.f32.mrf.mxu3 }
 0x1a9   :  { %v591_v6 = vmul.f32 0.2, %v583_v1 }
 0x1aa   :  { %v547_v7 = vpop.f32.mrf.mxu1 }
 0x1ab   :  { %v595_v9 = vmax.f32 %v583_v1, %v591_v6  ;;  %v548_v10 = vadd.f32 %v874_v47, %v547_v7 }
 0x1ad   :  { %v599_v12 = vadd.f32 %v595_v9, %v296_v8  ;;  %v567_v13 = vadd.f32 %v566_v11, %v548_v10 }
 0x1af   :  { %603 = vst [vmem:[%s1184_s5 + $0x8] sm:$0xff] %v599_v12 }
 0x1b0   :  { %v568_v21 = vpop.f32.mrf.mxu3 }
 0x1b1   :  { %v585_v3 = vpop.f32.mrf.mxu2 }
 0x1b2   :  { %v586_v15 = vadd.f32 %v585_v3, %v567_v13  ;;  %v549_v16 = vpop.f32.mrf.mxu1 }
 0x1b3   :  { %v550_v18 = vadd.f32 %v874_v47, %v549_v16 }
 0x1b4   :  { %v592_v17 = vmul.f32 0.2, %v586_v15 }
 0x1b5   :  { %v569_v23 = vadd.f32 %v568_v21, %v550_v18 }
 0x1b6   :  { %v596_v20 = vmax.f32 %v586_v15, %v592_v17 }
 0x1b8   :  { %v600_v22 = vadd.f32 %v596_v20, %v299_v19 }
 0x1b9   :  { %v587_v24 = vpop.f32.mrf.mxu2 }
 0x1ba   :  { %604 = vst [vmem:[%s1184_s5 + $0x10] sm:$0xff] %v600_v22  ;;  %v588_v26 = vadd.f32 %v587_v24, %v569_v23 }
 0x1bc   :  { %v593_v27 = vmul.f32 0.2, %v588_v26 }
 0x1be   :  { %v597_v29 = vmax.f32 %v588_v26, %v593_v27 }
 0x1c0   :  { %v601_v30 = vadd.f32 %v597_v29, %v301_v28 }
 0x1c2   :  { %605 = vst [vmem:[%s1184_s5 + $0x18] sm:$0xff] %v601_v30 }

</bundles_post_ra>
